<compile_context>
chip_gen: v6e
topology: v6e:2x2x1
jax: 0.10.0
libtpu: 0.0.40
codegen_flags: <defaults>
</compile_context>

<pallas_src>
import math

import jax
import jax.numpy as jnp
from jax.experimental import pallas as pl
from jax.experimental.pallas import tpu as pltpu

BN_EPS = 1e-5


# ----------------------------------------------------------------------------
# Single fused kernel (gridless: whole problem lives in VMEM).
# ----------------------------------------------------------------------------
def fused_action_network_kernel(xin_ref, mrow_ref, noise_ref, w1_ref, vecs_ref,
                                w2_ref, wh_ref, wf_ref, out_ref):
    n = xin_ref.shape[0]
    H = w2_ref.shape[0]
    asd = wf_ref.shape[0]
    A = wf_ref.shape[1]

    xin = xin_ref[...]                      # (N, 6) = [rotations | translations]
    rot = xin[:, 0:3]
    trans = xin[:, 3:6]                     # bbox scale folded into w1 rows 6:9
    m_row = mrow_ref[...]                   # (1, N)  mask / count(valid)
    noise = noise_ref[...]                  # (N, 2*asd) = [state noise | dir noise]
    w1 = w1_ref[...]                        # (9, H)
    vecs = vecs_ref[...]                    # (8, Wv)  packed row vectors

    b1, g1, be1 = vecs[0:1, :H], vecs[1:2, :H], vecs[2:3, :H]
    b2, g2, be2 = vecs[3:4, :H], vecs[4:5, :H], vecs[5:6, :H]
    bh = vecs[6:7, :2 * asd]
    bf = vecs[7:8, :A]

    # --- layer 1: concat([sin(rot), cos(rot), trans/bbox]) @ W1 expressed as a
    # split-K sum (identical algebra, avoids an in-kernel lane concat; MXU is
    # idle at these sizes so 3 small dots are free).
    h = (jnp.dot(jnp.sin(rot), w1[0:3], preferred_element_type=jnp.float32)
         + jnp.dot(jnp.cos(rot), w1[3:6], preferred_element_type=jnp.float32)
         + jnp.dot(trans, w1[6:9], preferred_element_type=jnp.float32)
         + b1)

    def masked_bn_relu(h, g, be):
        # Masked batch statistics via MXU row-vector matmuls; m_row already
        # carries the 1/count factor.  Two-pass (center, then square) variance.
        mu = jnp.dot(m_row, h, preferred_element_type=jnp.float32)        # (1, H)
        d = h - mu
        var = jnp.dot(m_row, d * d, preferred_element_type=jnp.float32)   # (1, H)
        return jnp.maximum(d * jax.lax.rsqrt(var + BN_EPS) * g + be, 0.0)

    h = masked_bn_relu(h, g1, be1)
    h = jnp.dot(h, w2_ref[...], preferred_element_type=jnp.float32) + b2
    h = masked_bn_relu(h, g2, be2)

    # --- fused mean|log_variance head: one MXU pass over (H, 2*asd) ----------
    head = jnp.dot(h, wh_ref[...], preferred_element_type=jnp.float32) + bh
    mean, logvar = head[:, :asd], head[:, asd:]
    sampled = noise[:, :asd] * jnp.exp(logvar * 0.5) + mean

    # --- action directions on all N rows (sublane-aligned) -------------------
    # succ[i] = head[(i + 1) % N]; the wrapped last row of each sequence is
    # dropped by the wrapper.  XLU sublane rotate, np.roll semantics.
    succ = pltpu.roll(head, shift=n - 1, axis=0)
    dmean = succ[:, :asd] - mean
    plv, slv = logvar, succ[:, asd:]
    mx = jnp.maximum(plv, slv)
    dlogvar = mx + jnp.log(1.0 + jnp.exp(-jnp.abs(plv - slv)))   # one-exp LSE
    dsamp = noise[:, asd:] * jnp.exp(dlogvar * 0.5) + dmean
    logits = (jnp.dot(dsamp, wf_ref[...], preferred_element_type=jnp.float32)
              + bf)

    # --- single lane-dense packed store:
    # [mean | logvar | sampled | dmean | dlogvar | dsampled | logits]
    out_ref[...] = jnp.concatenate(
        [head, sampled, dmean, dlogvar, dsamp, logits], axis=-1)


# ----------------------------------------------------------------------------
# Forward wrapper (only cheap packing / reshapes outside the kernel).
# ----------------------------------------------------------------------------
def action_network_v5_forward(params, rotations, translations, object_in_scene,
                              noise_states, noise_dirs, bbox_size):
    f32 = jnp.float32
    bs, obs, _ = rotations.shape
    H = params['w2'].shape[0]
    asd = params['wf'].shape[0]
    A = params['wf'].shape[1]
    n = bs * obs

    # pack rotations|translations into one (N, 6) input
    xin = jnp.concatenate([rotations, translations], axis=-1).reshape(n, 6).astype(f32)

    # mask row pre-divided by the valid count -> kernel never reduces/divides
    mask = object_in_scene.reshape(1, n).astype(f32)
    m_row = mask / jnp.maximum(jnp.sum(mask), 1.0)

    # fold 1/bbox into the translation rows of the first-layer weight
    w1 = params['w1'].astype(f32)                                  # (9, H)
    inv_bbox = (1.0 / bbox_size.astype(f32)).reshape(3, 1)
    w1 = jnp.concatenate([w1[0:6], w1[6:9] * inv_bbox], axis=0)

    # fuse the mean / log_variance heads into one (H, 2*asd) weight
    wh = jnp.concatenate([params['wm'], params['wv']], axis=1).astype(f32)
    bh = jnp.concatenate([params['bm'], params['bv']], axis=1).astype(f32)

    # stack the eight (1, *) row vectors into one (8, Wv) buffer (one DMA)
    Wv = max(H, 2 * asd, A)

    def _pad(v):
        v = v.astype(f32)
        return jnp.pad(v, ((0, 0), (0, Wv - v.shape[1])))

    vecs = jnp.concatenate(
        [_pad(params['b1']), _pad(params['g1']), _pad(params['be1']),
         _pad(params['b2']), _pad(params['g2']), _pad(params['be2']),
         _pad(bh), _pad(params['bf'])], axis=0)                    # (8, Wv)

    # pack state/direction noise into one (N, 2*asd) buffer; direction noise
    # gets a dummy row at the end of each sequence so its flat row index
    # equals the predecessor row index used inside the kernel.
    noise_s = noise_states.reshape(n, asd).astype(f32)
    noise_d = jnp.concatenate(
        [noise_dirs.astype(f32), jnp.zeros((bs, 1, asd), f32)], axis=1
    ).reshape(n, asd)
    noise = jnp.concatenate([noise_s, noise_d], axis=1)            # (N, 2*asd)

    vmem = pl.BlockSpec(memory_space=pltpu.MemorySpace.VMEM)
    packed = pl.pallas_call(
        fused_action_network_kernel,
        out_shape=jax.ShapeDtypeStruct((n, 6 * asd + A), f32),
        in_specs=[vmem] * 8,
        out_specs=vmem,
    )(xin, m_row, noise, w1, vecs,
      params['w2'].astype(f32), wh, params['wf'].astype(f32))

    # unpack (cheap XLA slices)
    out3 = packed.reshape(bs, obs, 6 * asd + A)
    mean = out3[..., 0:asd]
    logvar = out3[..., asd:2 * asd]
    sampled_states = out3[..., 2 * asd:3 * asd]
    folded_states_distribution = jnp.stack([mean, logvar], axis=2)

    dirs = out3[:, :-1, 3 * asd:]        # drop the wrap row of each sequence
    dmean = dirs[..., 0:asd]
    dlogvar = dirs[..., asd:2 * asd]
    dsamp = dirs[..., 2 * asd:3 * asd]
    logits = dirs[..., 3 * asd:]
    action_directions_distribution = jnp.stack([dmean, dlogvar], axis=2)

    return (logits, action_directions_distribution, dsamp,
            folded_states_distribution, sampled_states)


# ----------------------------------------------------------------------------
# Deterministic parameter initialization (matches the module's layer shapes).
# ----------------------------------------------------------------------------
def init_params(key, input_features, mlp_features, asd, actions_count):
    ks = jax.random.split(key, 5)

    def linear(k, fin, fout):
        kw, kb = jax.random.split(k)
        lim = 1.0 / math.sqrt(fin)
        w = jax.random.uniform(kw, (fin, fout), jnp.float32, -lim, lim)
        b = jax.random.uniform(kb, (1, fout), jnp.float32, -lim, lim)
        return w, b

    w1, b1 = linear(ks[0], input_features, mlp_features)
    w2, b2 = linear(ks[1], mlp_features, mlp_features)
    wm, bm = linear(ks[2], mlp_features, asd)
    wv, bv = linear(ks[3], mlp_features, asd)
    wf, bf = linear(ks[4], asd, actions_count)
    ones = jnp.ones((1, mlp_features), jnp.float32)
    zeros = jnp.zeros((1, mlp_features), jnp.float32)
    return dict(w1=w1, b1=b1, g1=ones, be1=zeros,
                w2=w2, b2=b2, g2=ones, be2=zeros,
                wm=wm, bm=bm, wv=wv, bv=bv, wf=wf, bf=bf)


if __name__ == "__main__":
    key = jax.random.PRNGKey(0)
    bs, obs = 2, 8
    mlp_features = 32            # layers_width
    asd = 8                      # action_space_dimension
    actions_count = 4
    input_features = 6 + 3       # sin/cos encoded rotations + normalized translations

    k_rot, k_tr, k_mask, k_ns, k_nd, k_par = jax.random.split(key, 6)
    rotations = jax.random.uniform(k_rot, (bs, obs, 3), jnp.float32, -3.14, 3.14)
    translations = jax.random.uniform(k_tr, (bs, obs, 3), jnp.float32, -1.0, 1.0)
    object_in_scene = jax.random.bernoulli(k_mask, 0.8, (bs, obs))
    object_in_scene = object_in_scene.at[:, 0].set(True)   # ensure mask nonempty
    # torch.randn noise of sample()/sample_variance() is supplied as input
    noise_states = jax.random.normal(k_ns, (bs, obs, asd), jnp.float32)
    noise_dirs = jax.random.normal(k_nd, (bs, obs - 1, asd), jnp.float32)
    bbox_size = jnp.array([2.0, 2.0, 2.0], jnp.float32)     # BoundingBox.get_size()

    params = init_params(k_par, input_features, mlp_features, asd, actions_count)

    fwd = jax.jit(action_network_v5_forward)
    outs = fwd(params, rotations, translations, object_in_scene,
               noise_states, noise_dirs, bbox_size)
    outs = jax.block_until_ready(outs)

    assert outs[0].shape == (bs, obs - 1, actions_count)
    assert outs[1].shape == (bs, obs - 1, 2, asd)
    assert outs[2].shape == (bs, obs - 1, asd)
    assert outs[3].shape == (bs, obs, 2, asd)
    assert outs[4].shape == (bs, obs, asd)
    assert all(bool(jnp.all(jnp.isfinite(o))) for o in outs)
    print("KERNEL_OK")
</pallas_src>

<mosaic_0001>
module attributes {stable_mosaic.version = 11 : i64} {
  func.func @fused_action_network_kernel(%arg0: memref<16x6xf32, #tpu.memory_space<vmem>>, %arg1: memref<1x16xf32, #tpu.memory_space<vmem>>, %arg2: memref<16x16xf32, #tpu.memory_space<vmem>>, %arg3: memref<9x32xf32, #tpu.memory_space<vmem>>, %arg4: memref<8x32xf32, #tpu.memory_space<vmem>>, %arg5: memref<32x32xf32, #tpu.memory_space<vmem>>, %arg6: memref<32x16xf32, #tpu.memory_space<vmem>>, %arg7: memref<8x4xf32, #tpu.memory_space<vmem>>, %arg8: memref<16x52xf32, #tpu.memory_space<vmem>>) attributes {dimension_semantics = [], scalar_prefetch = 0 : i64, scratch_operands = 0 : i64, tpu.core_type = #tpu.core_type<tc>} {
    %c0 = arith.constant 0 : index
    %c0_0 = arith.constant 0 : index
    %0 = vector.load %arg0[%c0, %c0_0] : memref<16x6xf32, #tpu.memory_space<vmem>>, vector<16x6xf32>
    %1 = vector.extract_strided_slice %0 {offsets = [0, 0], sizes = [16, 3], strides = [1, 1]} : vector<16x6xf32> to vector<16x3xf32>
    %2 = vector.extract_strided_slice %0 {offsets = [0, 3], sizes = [16, 3], strides = [1, 1]} : vector<16x6xf32> to vector<16x3xf32>
    %c0_1 = arith.constant 0 : index
    %c0_2 = arith.constant 0 : index
    %3 = vector.load %arg1[%c0_1, %c0_2] : memref<1x16xf32, #tpu.memory_space<vmem>>, vector<1x16xf32>
    %c0_3 = arith.constant 0 : index
    %c0_4 = arith.constant 0 : index
    %4 = vector.load %arg2[%c0_3, %c0_4] : memref<16x16xf32, #tpu.memory_space<vmem>>, vector<16x16xf32>
    %c0_5 = arith.constant 0 : index
    %c0_6 = arith.constant 0 : index
    %5 = vector.load %arg3[%c0_5, %c0_6] : memref<9x32xf32, #tpu.memory_space<vmem>>, vector<9x32xf32>
    %c0_7 = arith.constant 0 : index
    %c0_8 = arith.constant 0 : index
    %6 = vector.load %arg4[%c0_7, %c0_8] : memref<8x32xf32, #tpu.memory_space<vmem>>, vector<8x32xf32>
    %7 = vector.extract_strided_slice %6 {offsets = [0, 0], sizes = [1, 32], strides = [1, 1]} : vector<8x32xf32> to vector<1x32xf32>
    %8 = vector.extract_strided_slice %6 {offsets = [1, 0], sizes = [1, 32], strides = [1, 1]} : vector<8x32xf32> to vector<1x32xf32>
    %9 = vector.extract_strided_slice %6 {offsets = [2, 0], sizes = [1, 32], strides = [1, 1]} : vector<8x32xf32> to vector<1x32xf32>
    %10 = vector.extract_strided_slice %6 {offsets = [3, 0], sizes = [1, 32], strides = [1, 1]} : vector<8x32xf32> to vector<1x32xf32>
    %11 = vector.extract_strided_slice %6 {offsets = [4, 0], sizes = [1, 32], strides = [1, 1]} : vector<8x32xf32> to vector<1x32xf32>
    %12 = vector.extract_strided_slice %6 {offsets = [5, 0], sizes = [1, 32], strides = [1, 1]} : vector<8x32xf32> to vector<1x32xf32>
    %13 = vector.extract_strided_slice %6 {offsets = [6, 0], sizes = [1, 16], strides = [1, 1]} : vector<8x32xf32> to vector<1x16xf32>
    %14 = vector.extract_strided_slice %6 {offsets = [7, 0], sizes = [1, 4], strides = [1, 1]} : vector<8x32xf32> to vector<1x4xf32>
    %15 = math.sin %1 : vector<16x3xf32>
    %16 = vector.extract_strided_slice %5 {offsets = [0, 0], sizes = [3, 32], strides = [1, 1]} : vector<9x32xf32> to vector<3x32xf32>
    %cst = arith.constant dense<0.000000e+00> : vector<16x32xf32>
    %17 = tpu.matmul %15, %16, %cst {dimension_numbers = #tpu.dot_dimension_numbers<[1], [0], [0], [1], [0, 0, 1, 1], [], []>} : vector<16x3xf32>, vector<3x32xf32>, vector<16x32xf32> -> vector<16x32xf32>
    %18 = math.cos %1 : vector<16x3xf32>
    %19 = vector.extract_strided_slice %5 {offsets = [3, 0], sizes = [3, 32], strides = [1, 1]} : vector<9x32xf32> to vector<3x32xf32>
    %cst_9 = arith.constant dense<0.000000e+00> : vector<16x32xf32>
    %20 = tpu.matmul %18, %19, %cst_9 {dimension_numbers = #tpu.dot_dimension_numbers<[1], [0], [0], [1], [0, 0, 1, 1], [], []>} : vector<16x3xf32>, vector<3x32xf32>, vector<16x32xf32> -> vector<16x32xf32>
    %21 = arith.addf %17, %20 : vector<16x32xf32>
    %22 = vector.extract_strided_slice %5 {offsets = [6, 0], sizes = [3, 32], strides = [1, 1]} : vector<9x32xf32> to vector<3x32xf32>
    %cst_10 = arith.constant dense<0.000000e+00> : vector<16x32xf32>
    %23 = tpu.matmul %2, %22, %cst_10 {dimension_numbers = #tpu.dot_dimension_numbers<[1], [0], [0], [1], [0, 0, 1, 1], [], []>} : vector<16x3xf32>, vector<3x32xf32>, vector<16x32xf32> -> vector<16x32xf32>
    %24 = arith.addf %21, %23 : vector<16x32xf32>
    %25 = vector.broadcast %7 : vector<1x32xf32> to vector<16x32xf32>
    %26 = arith.addf %24, %25 : vector<16x32xf32>
    %cst_11 = arith.constant dense<0.000000e+00> : vector<1x32xf32>
    %27 = tpu.matmul %3, %26, %cst_11 {dimension_numbers = #tpu.dot_dimension_numbers<[1], [0], [0], [1], [0, 0, 1, 1], [], []>} : vector<1x16xf32>, vector<16x32xf32>, vector<1x32xf32> -> vector<1x32xf32>
    %28 = vector.broadcast %27 : vector<1x32xf32> to vector<16x32xf32>
    %29 = arith.subf %26, %28 : vector<16x32xf32>
    %30 = arith.mulf %29, %29 : vector<16x32xf32>
    %cst_12 = arith.constant dense<0.000000e+00> : vector<1x32xf32>
    %31 = tpu.matmul %3, %30, %cst_12 {dimension_numbers = #tpu.dot_dimension_numbers<[1], [0], [0], [1], [0, 0, 1, 1], [], []>} : vector<1x16xf32>, vector<16x32xf32>, vector<1x32xf32> -> vector<1x32xf32>
    %cst_13 = arith.constant 9.99999974E-6 : f32
    %32 = vector.broadcast %cst_13 : f32 to vector<1x32xf32>
    %33 = arith.addf %31, %32 : vector<1x32xf32>
    %34 = math.rsqrt %33 : vector<1x32xf32>
    %35 = vector.broadcast %34 : vector<1x32xf32> to vector<16x32xf32>
    %36 = arith.mulf %29, %35 : vector<16x32xf32>
    %37 = vector.broadcast %8 : vector<1x32xf32> to vector<16x32xf32>
    %38 = arith.mulf %36, %37 : vector<16x32xf32>
    %39 = vector.broadcast %9 : vector<1x32xf32> to vector<16x32xf32>
    %40 = arith.addf %38, %39 : vector<16x32xf32>
    %cst_14 = arith.constant 0.000000e+00 : f32
    %41 = vector.broadcast %cst_14 : f32 to vector<16x32xf32>
    %42 = arith.maximumf %40, %41 : vector<16x32xf32>
    %c0_15 = arith.constant 0 : index
    %c0_16 = arith.constant 0 : index
    %43 = vector.load %arg5[%c0_15, %c0_16] : memref<32x32xf32, #tpu.memory_space<vmem>>, vector<32x32xf32>
    %cst_17 = arith.constant dense<0.000000e+00> : vector<16x32xf32>
    %44 = tpu.matmul %42, %43, %cst_17 {dimension_numbers = #tpu.dot_dimension_numbers<[1], [0], [0], [1], [0, 0, 1, 1], [], []>} : vector<16x32xf32>, vector<32x32xf32>, vector<16x32xf32> -> vector<16x32xf32>
    %45 = vector.broadcast %10 : vector<1x32xf32> to vector<16x32xf32>
    %46 = arith.addf %44, %45 : vector<16x32xf32>
    %cst_18 = arith.constant dense<0.000000e+00> : vector<1x32xf32>
    %47 = tpu.matmul %3, %46, %cst_18 {dimension_numbers = #tpu.dot_dimension_numbers<[1], [0], [0], [1], [0, 0, 1, 1], [], []>} : vector<1x16xf32>, vector<16x32xf32>, vector<1x32xf32> -> vector<1x32xf32>
    %48 = vector.broadcast %47 : vector<1x32xf32> to vector<16x32xf32>
    %49 = arith.subf %46, %48 : vector<16x32xf32>
    %50 = arith.mulf %49, %49 : vector<16x32xf32>
    %cst_19 = arith.constant dense<0.000000e+00> : vector<1x32xf32>
    %51 = tpu.matmul %3, %50, %cst_19 {dimension_numbers = #tpu.dot_dimension_numbers<[1], [0], [0], [1], [0, 0, 1, 1], [], []>} : vector<1x16xf32>, vector<16x32xf32>, vector<1x32xf32> -> vector<1x32xf32>
    %cst_20 = arith.constant 9.99999974E-6 : f32
    %52 = vector.broadcast %cst_20 : f32 to vector<1x32xf32>
    %53 = arith.addf %51, %52 : vector<1x32xf32>
    %54 = math.rsqrt %53 : vector<1x32xf32>
    %55 = vector.broadcast %54 : vector<1x32xf32> to vector<16x32xf32>
    %56 = arith.mulf %49, %55 : vector<16x32xf32>
    %57 = vector.broadcast %11 : vector<1x32xf32> to vector<16x32xf32>
    %58 = arith.mulf %56, %57 : vector<16x32xf32>
    %59 = vector.broadcast %12 : vector<1x32xf32> to vector<16x32xf32>
    %60 = arith.addf %58, %59 : vector<16x32xf32>
    %cst_21 = arith.constant 0.000000e+00 : f32
    %61 = vector.broadcast %cst_21 : f32 to vector<16x32xf32>
    %62 = arith.maximumf %60, %61 : vector<16x32xf32>
    %c0_22 = arith.constant 0 : index
    %c0_23 = arith.constant 0 : index
    %63 = vector.load %arg6[%c0_22, %c0_23] : memref<32x16xf32, #tpu.memory_space<vmem>>, vector<32x16xf32>
    %cst_24 = arith.constant dense<0.000000e+00> : vector<16x16xf32>
    %64 = tpu.matmul %62, %63, %cst_24 {dimension_numbers = #tpu.dot_dimension_numbers<[1], [0], [0], [1], [0, 0, 1, 1], [], []>} : vector<16x32xf32>, vector<32x16xf32>, vector<16x16xf32> -> vector<16x16xf32>
    %65 = vector.broadcast %13 : vector<1x16xf32> to vector<16x16xf32>
    %66 = arith.addf %64, %65 : vector<16x16xf32>
    %67 = vector.extract_strided_slice %66 {offsets = [0, 0], sizes = [16, 8], strides = [1, 1]} : vector<16x16xf32> to vector<16x8xf32>
    %68 = vector.extract_strided_slice %66 {offsets = [0, 8], sizes = [16, 8], strides = [1, 1]} : vector<16x16xf32> to vector<16x8xf32>
    %69 = vector.extract_strided_slice %4 {offsets = [0, 0], sizes = [16, 8], strides = [1, 1]} : vector<16x16xf32> to vector<16x8xf32>
    %cst_25 = arith.constant 5.000000e-01 : f32
    %70 = vector.broadcast %cst_25 : f32 to vector<16x8xf32>
    %71 = arith.mulf %68, %70 : vector<16x8xf32>
    %72 = math.exp %71 : vector<16x8xf32>
    %73 = arith.mulf %69, %72 : vector<16x8xf32>
    %74 = arith.addf %73, %67 : vector<16x8xf32>
    %c15_i32 = arith.constant 15 : i32
    %75 = tpu.dynamic_rotate %66 by %c15_i32 dim 0 : vector<16x16xf32>, i32 -> vector<16x16xf32>
    %76 = vector.extract_strided_slice %75 {offsets = [0, 0], sizes = [16, 8], strides = [1, 1]} : vector<16x16xf32> to vector<16x8xf32>
    %77 = arith.subf %76, %67 : vector<16x8xf32>
    %78 = vector.extract_strided_slice %75 {offsets = [0, 8], sizes = [16, 8], strides = [1, 1]} : vector<16x16xf32> to vector<16x8xf32>
    %79 = arith.maximumf %68, %78 : vector<16x8xf32>
    %80 = arith.subf %68, %78 : vector<16x8xf32>
    %81 = math.absf %80 : vector<16x8xf32>
    %cst_26 = arith.constant 0.000000e+00 : f32
    %82 = vector.broadcast %cst_26 : f32 to vector<16x8xf32>
    %83 = arith.subf %82, %81 : vector<16x8xf32>
    %84 = math.exp %83 : vector<16x8xf32>
    %cst_27 = arith.constant 1.000000e+00 : f32
    %85 = vector.broadcast %cst_27 : f32 to vector<16x8xf32>
    %86 = arith.addf %85, %84 : vector<16x8xf32>
    %87 = math.log %86 : vector<16x8xf32>
    %88 = arith.addf %79, %87 : vector<16x8xf32>
    %89 = vector.extract_strided_slice %4 {offsets = [0, 8], sizes = [16, 8], strides = [1, 1]} : vector<16x16xf32> to vector<16x8xf32>
    %cst_28 = arith.constant 5.000000e-01 : f32
    %90 = vector.broadcast %cst_28 : f32 to vector<16x8xf32>
    %91 = arith.mulf %88, %90 : vector<16x8xf32>
    %92 = math.exp %91 : vector<16x8xf32>
    %93 = arith.mulf %89, %92 : vector<16x8xf32>
    %94 = arith.addf %93, %77 : vector<16x8xf32>
    %c0_29 = arith.constant 0 : index
    %c0_30 = arith.constant 0 : index
    %95 = vector.load %arg7[%c0_29, %c0_30] : memref<8x4xf32, #tpu.memory_space<vmem>>, vector<8x4xf32>
    %cst_31 = arith.constant dense<0.000000e+00> : vector<16x4xf32>
    %96 = tpu.matmul %94, %95, %cst_31 {dimension_numbers = #tpu.dot_dimension_numbers<[1], [0], [0], [1], [0, 0, 1, 1], [], []>} : vector<16x8xf32>, vector<8x4xf32>, vector<16x4xf32> -> vector<16x4xf32>
    %97 = vector.broadcast %14 : vector<1x4xf32> to vector<16x4xf32>
    %98 = arith.addf %96, %97 : vector<16x4xf32>
    %99 = tpu.concatenate %66, %74, %77, %88, %94, %98 in 1 : vector<16x16xf32>, vector<16x8xf32>, vector<16x8xf32>, vector<16x8xf32>, vector<16x8xf32>, vector<16x4xf32> -> vector<16x52xf32>
    %c0_32 = arith.constant 0 : index
    %c0_33 = arith.constant 0 : index
    %100 = vector.load %arg8[%c0_32, %c0_33] : memref<16x52xf32, #tpu.memory_space<vmem>>, vector<16x52xf32>
    tpu.vector_store %arg8[%c0_32, %c0_33], %99 {strides = array<i32>} : memref<16x52xf32, #tpu.memory_space<vmem>>, vector<16x52xf32>,
    return
  }
}

</mosaic_0001>

<bundles_post_ra>
// kernel: action_network_v5_forward.1
= control target key start
LH: loop header
LB: loop body
LE: loop exit
PB: predicated region body
PF: predicated region fallthrough
CT: control target
= control target key end

     0   :  { %vm460_vm0 = vcmask 1042432   ;;  %s1646_s11 = smov 125   ;;  %vm628_vm1 = vcmask 1041408   ;;  %v1647_v31 = vmov 683565275   ;;  %s1656_s13 = smov 120   ;;  %s1938_s0 = inlined_call_operand.vmem [shape: f32[16,6], index: 0, kind: input, shape index: {}]   ;;  %s1939_s3 = inlined_call_operand.vmem [shape: f32[9,32], index: 3, kind: input, shape index: {}]   ;;  %s1940_s4 = inlined_call_operand.vmem [shape: f32[8,32], index: 4, kind: input, shape index: {}]   ;;  %s1941_s1 = inlined_call_operand.vmem [shape: f32[1,16], index: 1, kind: input, shape index: {}]   ;;  %s1942_s5 = inlined_call_operand.vmem [shape: f32[32,32], index: 5, kind: input, shape index: {}]   ;;  %s1943_s6 = inlined_call_operand.vmem [shape: f32[32,16], index: 6, kind: input, shape index: {}]   ;;  %s1944_s7 = inlined_call_operand.vmem [shape: f32[8,4], index: 7, kind: input, shape index: {}]   ;;  %s1945_s2 = inlined_call_operand.vmem [shape: f32[16,16], index: 2, kind: input, shape index: {}]   ;;  %s1946_s8 = inlined_call_operand.vmem [shape: f32[16,52], index: 8, kind: output, shape index: {}]  }
   0x1   :  { %v1709_v0 = vld [vmem:[%s1938_s0] sm:$0xff]  ;;  %v1714_v1 = vld [vmem:[%s1938_s0 + $0x8] sm:$0xff]  ;;  %v1648_v33 = vmov 2475754826   ;;  %v1649_v36 = vmov 2131351028  }
   0x2   :  { %v34_v2 = vld [vmem:[%s1939_s3] sm:$0xff]  ;;  %623 = vrot.lane.b32.xlu0 %v1709_v0, %s1646_s11  ;;  %v40_v3 = vand.u32 2139095040, %v1709_v0  ;;  %v144_v4 = vand.u32 2139095040, %v1714_v1  ;;  %v35_v5 = vld [vmem:[%s1939_s3 + $0x8] sm:$0x1]  ;;  %s1658_s0 = smov 32  }
   0x3   :  { %v452_v6 = vrot.slane %v34_v2, 3  ;;  %1530 = vmatprep.subr.msk.mxu1 %vm460_vm0, %v34_v2  ;;  %v37_v7 = vand.u32 2147483647, %v1709_v0  ;;  %v630_v10 = vrot.slane %v35_v5, 6  ;;  %v141_v12 = vand.u32 2147483647, %v1714_v1 }
   0x4   :  { %1531 = vmatpush3.msk.msra.mxu1 %vm460_vm0, %v34_v2  ;;  %v41_v8 = vshrl.u32 %v40_v3, 23  ;;  %v145_v9 = vshrl.u32 %v144_v4, 23  ;;  %v629_v16 = vrot.slane %v34_v2, 6  ;;  %v1650_v38 = vmov 2102212464   ;;  %s1660_s3 = smov 48  }
   0x5   :  { %1525 = vmatprep.subr.msk.mxu0 %vm460_vm0, %v452_v6  ;;  %v44_v11 = vand.u32 8388607, %v37_v7  ;;  %v148_v15 = vand.u32 8388607, %v141_v12  ;;  %v1651_v40 = vmov 920167782  }
   0x6   :  { %1526 = vmatpush3.msk.msra.mxu0 %vm460_vm0, %v452_v6  ;;  %v1454_v13 = vadd.s32 4294967169, %v41_v8  ;;  %v1458_v14 = vadd.s32 4294967169, %v145_v9  ;;  %625 = vrot.lane.b32.xlu0 %v1714_v1, %s1646_s11  ;;  %v1736_v21 = vsel %vm628_vm1, %v629_v16, %v630_v10  ;;  %v1652_v47 = vmov 1326507024  }
   0x7   :  { %v45_v19 = vor.u32 8388608, %v44_v11  ;;  %v149_v20 = vor.u32 8388608, %v148_v15  ;;  %1535 = vmatprep.subr.msk.mxu0 %vm460_vm0, %v1736_v21  ;;  %vm39_vm1 = vcmp.lt.s32.totalorder %v1709_v0, 0 }
   0x8   :  { %v47_v17 = vadd.s32 1, %v1454_v13  ;;  %v151_v18 = vadd.s32 1, %v1458_v14 }
   0x9   :  { %v1740_v27 = vshll.u32 %v45_v19, 8  ;;  %v1742_v28 = vshll.u32 %v149_v20, 8 }
   0xa   :  { %vm48_vm2 = vcmp.gt.s32.totalorder %v47_v17, 0  ;;  %vm152_vm3 = vcmp.gt.s32.totalorder %v151_v18, 0 }
   0xb   :  { %v49_v22 = vsel %vm48_vm2, %v47_v17, 0  ;;  %v153_v23 = vsel %vm152_vm3, %v151_v18, 0  ;;  %vm38_vm2 = vcmp.le.f32.partialorder %v37_v7, 0.7853982  ;;  %vm143_vm3 = vcmp.lt.s32.totalorder %v1714_v1, 0 }
   0xc   :  { %v51_v24 = vand.u32 31, %v49_v22  ;;  %v155_v25 = vand.u32 31, %v153_v23  ;;  %v50_v26 = vshrl.u32 %v49_v22, 5  ;;  %v1744_v30 = vshrl.u32 %v153_v23, 5 }
   0xe   :  { %v52_v29 = vsub.s32 32, %v51_v24  ;;  %v54_v32 = vshll.u32 %v1647_v31, %v51_v24  ;;  %v57_v34 = vshll.u32 %v1648_v33, %v51_v24  ;;  %v156_v35 = vsub.s32 32, %v155_v25 }
   0xf   :  { %v60_v37 = vshll.u32 %v1649_v36, %v51_v24  ;;  %v63_v39 = vshll.u32 %v1650_v38, %v51_v24  ;;  %v66_v41 = vshll.u32 %v1651_v40, %v51_v24  ;;  %vm69_vm4 = vcmp.lt.s32.totalorder %v50_v26, 1 }
  0x10   :  { %v53_v42 = vshrl.u32 %v1647_v31, %v52_v29  ;;  %v55_v43 = vshrl.u32 %v1648_v33, %v52_v29  ;;  %v58_v44 = vshrl.u32 %v1649_v36, %v52_v29  ;;  %v61_v45 = vshrl.u32 %v1650_v38, %v52_v29 }
  0x11   :  { %v64_v46 = vshrl.u32 %v1651_v40, %v52_v29  ;;  %v67_v48 = vshrl.u32 %v1652_v47, %v52_v29  ;;  %vm70_vm5 = vcmp.lt.s32.totalorder %v50_v26, 2  ;;  %vm72_vm6 = vcmp.lt.s32.totalorder %v50_v26, 4 }
  0x12   :  { %v56_v49 = vor.u32 %v55_v43, %v54_v32  ;;  %v59_v50 = vor.u32 %v58_v44, %v57_v34  ;;  %v62_v51 = vor.u32 %v61_v45, %v60_v37  ;;  %vm71_vm7 = vcmp.lt.s32.totalorder %v50_v26, 3 }
  0x13   :  { %v65_v52 = vor.u32 %v64_v46, %v63_v39  ;;  %v68_v53 = vor.u32 %v67_v48, %v66_v41  ;;  %v171_v54 = vshrl.u32 %v1652_v47, %v156_v35  ;;  %v158_v62 = vshll.u32 %v1647_v31, %v155_v25 }
  0x14   :  { %v73_v55 = vsel %vm69_vm4, %v53_v42, %v56_v49  ;;  %v74_v56 = vsel %vm72_vm6, %v62_v51, 2102212464  ;;  %v77_v57 = vsel %vm69_vm4, %v56_v49, %v59_v50  ;;  %v81_v58 = vsel %vm69_vm4, %v59_v50, %v62_v51 }
  0x15   :  { %v75_v59 = vsel %vm71_vm7, %v59_v50, %v74_v56  ;;  %v78_v60 = vsel %vm72_vm6, %v65_v52, 920167782  ;;  %v82_v61 = vsel %vm72_vm6, %v68_v53, 1326507024  ;;  %v157_v3 = vshrl.u32 %v1647_v31, %v156_v35 }
  0x16   :  { %v79_v63 = vsel %vm71_vm7, %v62_v51, %v78_v60  ;;  %v83_v2 = vsel %vm71_vm7, %v65_v52, %v82_v61  ;;  %v159_v4 = vshrl.u32 %v1648_v33, %v156_v35  ;;  %v76_v5 = vsel %vm70_vm5, %v73_v55, %v75_v59 }
  0x17   :  { %v80_v6 = vsel %vm70_vm5, %v77_v57, %v79_v63  ;;  %v84_v8 = vsel %vm70_vm5, %v81_v58, %v83_v2  ;;  %v161_v9 = vshll.u32 %v1648_v33, %v155_v25  ;;  %v162_v16 = vshrl.u32 %v1649_v36, %v156_v35 }
  0x18   :  { %v1750_v10 = vmul.u32.u64.low %v1740_v27, %v84_v8  ;;  %v1751_v11 = vmul.u32.u64.high %v1740_v27, %v84_v8, %v1750_v10  ;;  %v1754_v13 = vmul.u32.u64.low %v1740_v27, %v80_v6  ;;  %v1755_v14 = vmul.u32.u64.high %v1740_v27, %v80_v6, %v1754_v13 }
  0x19   :  { %v160_v15 = vor.u32 %v159_v4, %v158_v62  ;;  %v164_v17 = vshll.u32 %v1649_v36, %v155_v25  ;;  %v165_v18 = vshrl.u32 %v1650_v38, %v156_v35  ;;  %v167_v19 = vshll.u32 %v1650_v38, %v155_v25 }
  0x1a   :  { %v168_v20 = vshrl.u32 %v1651_v40, %v156_v35  ;;  %v170_v22 = vshll.u32 %v1651_v40, %v155_v25  ;;  %vm173_vm8 = vcmp.lt.s32.totalorder %v1744_v30, 1  ;;  %v92_v23 = vmul.u32 %v1740_v27, %v76_v5 }
  0x1b   :  { %v163_v24 = vor.u32 %v162_v16, %v161_v9  ;;  %v166_v26 = vor.u32 %v165_v18, %v164_v17  ;;  %vm174_vm9 = vcmp.lt.s32.totalorder %v1744_v30, 2  ;;  %vm94_vm10 = vc.u32 %v1751_v11, %v1754_v13 }
  0x1c   :  { %v95_v29 = vadd.s32 1, %v1755_v14  ;;  %v169_v31 = vor.u32 %v168_v20, %v167_v19  ;;  %vm175_vm11 = vcmp.lt.s32.totalorder %v1744_v30, 3  ;;  %v172_v32 = vor.u32 %v171_v54, %v170_v22 }
  0x1d   :  { %vm176_vm12 = vcmp.lt.s32.totalorder %v1744_v30, 4  ;;  %v177_v25 = vsel %vm173_vm8, %v157_v3, %v160_v15  ;;  %v181_v27 = vsel %vm173_vm8, %v160_v15, %v163_v24  ;;  %v185_v36 = vsel %vm173_vm8, %v163_v24, %v166_v26 }
  0x1e   :  { %v96_v33 = vsel %vm94_vm10, %v95_v29, %v1755_v14  ;;  %v178_v34 = vsel %vm176_vm12, %v166_v26, 2102212464  ;;  %v182_v35 = vsel %vm176_vm12, %v169_v31, 920167782  ;;  %v186_v40 = vsel %vm176_vm12, %v172_v32, 1326507024 }
  0x1f   :  { %v97_v37 = vadd.s32 %v96_v33, %v92_v23  ;;  %v179_v38 = vsel %vm175_vm11, %v163_v24, %v178_v34  ;;  %v183_v39 = vsel %vm175_vm11, %v166_v26, %v182_v35  ;;  %v187_v43 = vsel %vm175_vm11, %v169_v31, %v186_v40 }
  0x20   :  { %v180_v41 = vsel %vm174_vm9, %v177_v25, %v179_v38  ;;  %v184_v42 = vsel %vm174_vm9, %v181_v27, %v183_v39  ;;  %v188_v45 = vsel %vm174_vm9, %v185_v36, %v187_v43  ;;  %v93_v2 = vadd.s32 %v1754_v13, %v1751_v11 }
  0x21   :  { %v98_v44 = vadd.s32 536870912, %v97_v37  ;;  %v1778_v46 = vmul.u32.u64.low %v1742_v28, %v184_v42  ;;  %v1779_v47 = vmul.u32.u64.high %v1742_v28, %v184_v42, %v1778_v46  ;;  %v196_v51 = vmul.u32 %v1742_v28, %v180_v41 }
  0x22   :  { %v1782_v48 = vmul.u32.u64.low %v1742_v28, %v188_v45  ;;  %v1783_v49 = vmul.u32.u64.high %v1742_v28, %v188_v45, %v1782_v48  ;;  %vm142_vm4 = vcmp.le.f32.partialorder %v141_v12, 0.7853982  ;;  %vm129_vm11 = vweird.f32 %v1709_v0 }
  0x23   :  { %v99_v50 = vshrl.u32 %v98_v44, 30  ;;  %v199_v53 = vadd.s32 1, %v1779_v47  ;;  %vm453_vm12 = vcmask 23552  }
  0x24   :  { %vm198_vm13 = vc.u32 %v1783_v49, %v1778_v46  ;;  %v197_v20 = vadd.s32 %v1778_v46, %v1783_v49 }
  0x25   :  { %v100_v52 = vshll.u32 %v99_v50, 30  ;;  %v200_v30 = vsel %vm198_vm13, %v199_v53, %v1779_v47  ;;  %v123_v29 = vsub.s32 4, %v99_v50 }
  0x26   :  { %v201_v55 = vadd.s32 %v200_v30, %v196_v51 }
  0x27   :  { %v101_v54 = vsub.s32 %v97_v37, %v100_v52  ;;  %v124_v35 = vsel %vm39_vm1, %v123_v29, %v99_v50 }
  0x28   :  { %v202_v57 = vadd.s32 536870912, %v201_v55  ;;  %v126_v40 = vsel %vm38_vm2, 0, %v124_v35 }
  0x29   :  { %v103_v56 = vsub.s32 0, %v101_v54  ;;  %v130_v43 = vadd.s32 3, %v126_v40  ;;  %v338_v47 = vand.u32 3, %v126_v40 }
  0x2a   :  { %v203_v59 = vshrl.u32 %v202_v57, 30 }
  0x2b   :  { %v1455_v58 = vmin.u32 %v103_v56, %v101_v54  ;;  %v131_v48 = vand.u32 3, %v130_v43  ;;  %vm343_vm5 = vcmp.eq.s32.totalorder %v338_v47, 2  ;;  %vm340_vm7 = vcmp.eq.s32.totalorder %v338_v47, 0  ;;  %v896_v43 = vld [vmem:[%s1942_s5 + $0x10] sm:$0xff] }
  0x2c   :  { %v204_v61 = vshll.u32 %v203_v59, 30  ;;  %v227_v42 = vsub.s32 4, %v203_v59  ;;  %vm339_vm9 = vcmp.lt.s32.totalorder %v338_v47, 2 }
  0x2d   :  { %v105_v60 = vclz %v1455_v58  ;;  %vm136_vm6 = vcmp.eq.s32.totalorder %v131_v48, 2  ;;  %vm133_vm8 = vcmp.eq.s32.totalorder %v131_v48, 0  ;;  %vm132_vm10 = vcmp.lt.s32.totalorder %v131_v48, 2 }
  0x2e   :  { %v205_v63 = vsub.s32 %v201_v55, %v204_v61  ;;  %v228_v45 = vsel %vm143_vm3, %v227_v42, %v203_v59  ;;  %v897_v42 = vld [vmem:[%s1942_s5 + $0x18] sm:$0xff] }
  0x2f   :  { %v1456_v62 = vadd.s32 4294967294, %v105_v60  ;;  %v230_v49 = vsel %vm142_vm4, 0, %v228_v45 }
  0x30   :  { %v207_v3 = vsub.s32 0, %v205_v63  ;;  %v234_v53 = vadd.s32 3, %v230_v49  ;;  %v441_v59 = vand.u32 3, %v230_v49 }
  0x31   :  { %vm1457_vm14 = vcmp.lt.s32.totalorder %v1456_v62, 0 }
  0x32   :  { %v108_v28 = vsel %vm1457_vm14, 0, %v1456_v62  ;;  %v1459_v8 = vmin.u32 %v207_v3, %v205_v63  ;;  %v235_v60 = vand.u32 3, %v234_v53  ;;  %vm446_vm13 = vcmp.eq.s32.totalorder %v441_v59, 2 }
  0x33   :  { %v109_v4 = vsub.s32 32, %v108_v28  ;;  %v110_v5 = vshll.u32 %v101_v54, %v108_v28  ;;  %v113_v6 = vsub.s32 4294967266, %v108_v28 }
  0x34   :  { %v209_v14 = vclz %v1459_v8  ;;  %vm240_vm14 = vcmp.eq.s32.totalorder %v235_v60, 2 }
  0x35   :  { %v111_v9 = vshrl.u32 %v93_v2, %v109_v4  ;;  %v114_v10 = vadd.s32 127, %v113_v6 }
  0x36   :  { %v1460_v17 = vadd.s32 4294967294, %v209_v14 }
  0x37   :  { %v112_v15 = vor.u32 %v111_v9, %v110_v5  ;;  %v115_v16 = vshll.u32 %v114_v10, 23 }
  0x38   :  { %vm1461_vm15 = vcmp.lt.s32.totalorder %v1460_v17, 0 }
  0x39   :  { %v116_v18 = vor.u32 4788187, %v115_v16  ;;  %v119_v19 = vcvt.s32.f32 %v112_v15  ;;  %v212_v11 = vsel %vm1461_vm15, 0, %v1460_v17  ;;  %vm443_vm15 = vcmp.eq.s32.totalorder %v441_v59, 0 }
  0x3a   :  { %v213_v13 = vsub.s32 32, %v212_v11  ;;  %v214_v23 = vshll.u32 %v205_v63, %v212_v11  ;;  %v217_v24 = vsub.s32 4294967266, %v212_v11  ;;  %v715_v17 = vlaneseq }
  0x3b   :  { %v117_v22 = vand.u32 2147483647, %v116_v18 }
  0x3c   :  { %v215_v31 = vshrl.u32 %v197_v20, %v213_v13  ;;  %v218_v32 = vadd.s32 127, %v217_v24 }
  0x3d   :  { %v120_v26 = vmul.f32 %v119_v19, %v117_v22  ;;  %v1823_v22 = vld [vmem:[%s1940_s4] sm:$0xff] }
  0x3e   :  { %v216_v27 = vor.u32 %v215_v31, %v214_v23  ;;  %v219_v33 = vshll.u32 %v218_v32, 23 }
  0x3f   :  { %v121_v25 = vxor.u32 2147483648, %v120_v26 }
  0x40   :  { %v220_v37 = vor.u32 4788187, %v219_v33  ;;  %v223_v38 = vcvt.s32.f32 %v216_v27 }
  0x41   :  { %v122_v34 = vsel %vm39_vm1, %v121_v25, %v120_v26  ;;  %vm237_vm1 = vcmp.eq.s32.totalorder %v235_v60, 0 }
  0x42   :  { %v125_v36 = vsel %vm38_vm2, %v1709_v0, %v122_v34  ;;  %v221_v39 = vand.u32 2147483647, %v220_v37  ;;  %vm442_vm2 = vcmp.lt.s32.totalorder %v441_v59, 2  ;;  %v1830_v34 = vld [vmem:[%s1941_s1] sm:$0x1] }
  0x43   :  { %1618 = vcosq.f32 %v125_v36 }
  0x44   :  { %1620 = vsinq.f32 %v125_v36  ;;  %v224_v41 = vmul.f32 %v223_v38, %v221_v39 }
  0x46   :  { %v225_v7 = vxor.u32 2147483648, %v224_v41 }
  0x48   :  { %v226_v44 = vsel %vm143_vm3, %v225_v7, %v224_v41  ;;  %vm236_vm3 = vcmp.lt.s32.totalorder %v235_v60, 2  ;;  %v895_v7 = vld [vmem:[%s1942_s5 + $0x8] sm:$0xff] }
  0x49   :  { %v229_v46 = vsel %vm142_vm4, %v1714_v1, %v226_v44  ;;  %vm233_vm4 = vweird.f32 %v1714_v1  ;;  %v1653_v1 = vmov 0.0   ;;  %v894_v44 = vld [vmem:[%s1942_s5] sm:$0xff] }
  0x4a   :  { %1622 = vcosq.f32 %v229_v46  ;;  %1540 = vmatprep.subr.mxu1 %v1653_v1 }
  0x4b   :  { %1624 = vsinq.f32 %v229_v46 }
  0x50   :  { %v1619_v50 = vpop.eup %1618 }
  0x51   :  { %v1621_v51 = vpop.eup %1620  ;;  %v137_v52 = vxor.u32 2147483648, %v1619_v50 }
  0x52   :  { %v134_v54 = vxor.u32 2147483648, %v1621_v51 }
  0x53   :  { %v345_v12 = vsel %vm343_vm5, %v137_v52, %v1621_v51  ;;  %v138_v30 = vsel %vm136_vm6, %v137_v52, %v1621_v51  ;;  %vm1654_vm5 = vmmov 0   ;;  %vm902_vm6 = vcmask 261120  }
  0x54   :  { %v342_v55 = vsel %vm340_vm7, %v1619_v50, %v134_v54  ;;  %v135_v56 = vsel %vm133_vm8, %v1619_v50, %v134_v54  ;;  %vm1318_vm8 = vcmask 64512  }
  0x55   :  { %v346_v57 = vsel %vm339_vm9, %v342_v55, %v345_v12  ;;  %v139_v58 = vsel %vm132_vm10, %v135_v56, %v138_v30  ;;  %vm1436_vm9 = vcmask 195584   ;;  %vm1444_vm10 = vcmask 392192  }
  0x56   :  { %v347_v61 = vsel %vm129_vm11, nan, %v346_v57  ;;  %v140_v62 = vsel %vm129_vm11, nan, %v139_v58  ;;  %vm1441_vm11 = vcmask 326656  }
  0x57   :  { %1527 = vmatprep.mubr.msk.f32.mxu0 %vm453_vm12, %v347_v61  ;;  %1532 = vmatprep.mubr.msk.f32.mxu1 %vm453_vm12, %v140_v62  ;;  %v1623_v63 = vpop.eup %1622 }
  0x58   :  { %v1625_v2 = vpop.eup %1624  ;;  %v241_v0 = vxor.u32 2147483648, %v1623_v63 }
  0x59   :  { %v238_v28 = vxor.u32 2147483648, %v1625_v2 }
  0x5a   :  { %v448_v3 = vsel %vm446_vm13, %v241_v0, %v1625_v2  ;;  %v242_v4 = vsel %vm240_vm14, %v241_v0, %v1625_v2 }
  0x5b   :  { %v445_v5 = vsel %vm443_vm15, %v1623_v63, %v238_v28  ;;  %v239_v6 = vsel %vm237_vm1, %v1623_v63, %v238_v28 }
  0x5c   :  { %v449_v8 = vsel %vm442_vm2, %v445_v5, %v448_v3  ;;  %v243_v9 = vsel %vm236_vm3, %v239_v6, %v242_v4 }
  0x5d   :  { %v450_v10 = vsel %vm233_vm4, nan, %v449_v8  ;;  %v244_v14 = vsel %vm233_vm4, nan, %v243_v9 }
  0x5e   :  { %1528 = vmatmul.mubr.msk.f32.vlgmr.msra.gmra.mxu0 %vm453_vm12, %v450_v10  ;;  %1533 = vmatmul.mubr.msk.f32.vlgmr.msra.gmra.mxu1 %vm453_vm12, %v244_v14  ;;  %v1156_v10 = vld [vmem:[%s1943_s6 + $0x18] sm:$0xff]  ;;  %v1155_v14 = vld [vmem:[%s1943_s6 + $0x10] sm:$0xff] }
  0x5f   :  { %1536 = vmatpush3.msk.msra.mxu0 %vm460_vm0, %v1736_v21  ;;  %1544 = vmatprep.mubr.msk.f32.mxu1 %vm1654_vm5, %v1653_v1  ;;  %v1815_v21 = vshrl.u32 %v715_v17, 7  ;;  %vm721_vm0 = vcmask 130048  }
  0x60   :  { %1547 = vmatprep.subr.mxu0 %v1653_v1 }
  0x61   :  { %v1818_v20 = vsub.s32 0, %v1815_v21  ;;  %v882_v48 = vsub.s32 1, %v1815_v21  ;;  %v888_v49 = vsub.s32 2, %v1815_v21  ;;  %v900_v60 = vsub.s32 3, %v1815_v21 }
  0x62   :  { %vm1264_vm7 = vcmp.lt.s32.totalorder %v1815_v21, 7 }
  0x63   :  { %v718_v24 = vrot.slane %v1823_v22, %v1818_v20  ;;  %v883_v52 = vrot.slane %v1823_v22, %v882_v48  ;;  %v889_v12 = vrot.slane %v1823_v22, %v888_v49  ;;  %v901_v61 = vrot.slane %v1823_v22, %v900_v60 }
  0x74   :  { %v624_v15 = vpop.permute.xlu0 %623 }
  0x75   :  { %1537 = vmatprep.mubr.msk.f32.mxu0 %vm453_vm12, %v624_v15  ;;  %v1154_v15 = vld [vmem:[%s1943_s6 + $0x8] sm:$0xff] }
  0x78   :  { %v626_v16 = vpop.permute.xlu0 %625 }
  0x79   :  { %1538 = vmatmul.mubr.msk.f32.vlgmr.msra.gmra.mxu0 %vm453_vm12, %v626_v16  ;;  %v1153_v16 = vld [vmem:[%s1943_s6] sm:$0xff]  ;;  %s1655_s6 = smov 8   ;;  %vm1447_vm12 = vcmask 424960  }
  0x7a   :  { %1551 = vmatprep.mubr.msk.f32.mxu0 %vm1654_vm5, %v1653_v1 }
 0x11e   :  { %v1529_v18 = vpop.f32.mrf.mxu0  ;;  %v1534_v19 = vpop.f32.mrf.mxu1 }
 0x11f   :  { %v618_v23 = vadd.f32 %v1534_v19, %v1529_v18  ;;  %v1141_v19 = vsub.s32 4, %v1815_v21 }
 0x120   :  { %v529_v11 = vpop.f32.mrf.mxu0  ;;  %v612_v13 = vpop.f32.mrf.mxu1 }
 0x121   :  { %v613_v29 = vadd.f32 %v612_v13, %v529_v11  ;;  %v1147_v11 = vsub.s32 5, %v1815_v21 }
 0x139   :  { %v1539_v26 = vpop.f32.mrf.mxu0 }
 0x13a   :  { %v714_v31 = vadd.f32 %v1539_v26, %v618_v23 }
 0x13b   :  { %v704_v32 = vpop.f32.mrf.mxu0 }
 0x13c   :  { %v720_v25 = vadd.f32 %v718_v24, %v714_v31  ;;  %v713_v27 = vadd.f32 %v704_v32, %v613_v29  ;;  %v1148_v31 = vrot.slane %v1823_v22, %v1147_v11 }
 0x13e   :  { %v719_v33 = vadd.f32 %v718_v24, %v713_v27  ;;  %1541 = vmatpush3.msra.mxu1 %v720_v25  ;;  %v1142_v24 = vrot.slane %v1823_v22, %v1141_v19 }
 0x13f   :  { %1542 = vmatprep.subr.mxu1 %v1653_v1 }
 0x140   :  { %1543 = vmatpush3.msra.mxu1 %v719_v33 }
 0x141   :  { %1545 = vmatmul.mubr.msk.f32.vlgmr.msra.gmra.mxu1 %vm721_vm0, %v1830_v34  ;;  %1554 = vmatprep.subr.mxu1 %v897_v42 }
 0x142   :  { %1555 = vmatpush3.msra.mxu1 %v897_v42 }
 0x143   :  { %1556 = vmatprep.subr.mxu1 %v896_v43 }
 0x144   :  { %1557 = vmatpush3.msra.mxu1 %v896_v43 }
 0x145   :  { %1558 = vmatprep.subr.mxu1 %v895_v7 }
 0x146   :  { %1559 = vmatpush3.msra.mxu1 %v895_v7 }
 0x147   :  { %1560 = vmatprep.subr.mxu1 %v894_v44 }
 0x148   :  { %1561 = vmatpush3.msra.mxu1 %v894_v44 }
 0x149   :  { %1579 = vmatprep.subr.mxu1 %v1156_v10 }
 0x201   :  { %v791_v35 = vpop.f32.mrf.mxu1 }
 0x202   :  { %v798_v36 = vrot.slane %v791_v35, %v1818_v20 }
 0x203   :  { %v1546_v37 = vpop.f32.mrf.mxu1 }
 0x204   :  { %v799_v38 = vsub.f32 %v719_v33, %v798_v36  ;;  %v800_v39 = vsub.f32 %v720_v25, %v798_v36  ;;  %v1159_v36 = vsub.s32 6, %v1815_v21 }
 0x206   :  { %v802_v40 = vmul.f32 %v800_v39, %v800_v39  ;;  %v801_v41 = vmul.f32 %v799_v38, %v799_v38 }
 0x208   :  { %1548 = vmatpush3.msra.mxu0 %v802_v40 }
 0x209   :  { %1549 = vmatprep.subr.mxu0 %v1653_v1 }
 0x20a   :  { %1550 = vmatpush3.msra.mxu0 %v801_v41 }
 0x20b   :  { %1552 = vmatmul.mubr.msk.f32.vlgmr.msra.gmra.mxu0 %vm721_vm0, %v1830_v34  ;;  %1565 = vmatprep.subr.mxu0 %v1653_v1 }
 0x20c   :  { %1569 = vmatprep.mubr.msk.f32.mxu0 %vm1654_vm5, %v1653_v1 }
 0x2cb   :  { %v869_v45 = vpop.f32.mrf.mxu0 }
 0x2cc   :  { %v870_v46 = vadd.f32 1e-05, %v869_v45 }
 0x2cd   :  { %v1553_v47 = vpop.f32.mrf.mxu0 }
 0x2ce   :  { %1626 = vrsqrt.f32 %v870_v46 }
 0x2db   :  { %v1627_v50 = vpop.eup %1626 }
 0x2dc   :  { %v877_v51 = vrot.slane %v1627_v50, %v1818_v20 }
 0x2de   :  { %v878_v53 = vmul.f32 %v877_v51, %v799_v38  ;;  %v879_v54 = vmul.f32 %v877_v51, %v800_v39 }
 0x2e0   :  { %v884_v30 = vmul.f32 %v883_v52, %v878_v53  ;;  %v885_v55 = vmul.f32 %v883_v52, %v879_v54 }
 0x2e2   :  { %v890_v56 = vadd.f32 %v889_v12, %v884_v30  ;;  %v891_v57 = vadd.f32 %v889_v12, %v885_v55 }
 0x2e4   :  { %v892_v58 = vmax.f32 %v890_v56, 0.0  ;;  %v893_v59 = vmax.f32 %v891_v57, 0.0 }
 0x2e6   :  { %1562 = vmatprep.mubr.msk.f32.mxu1 %vm902_vm6, %v892_v58 }
 0x2e7   :  { %1563 = vmatmul.mubr.msk.f32.vlgmr.msra.gmra.mxu1 %vm902_vm6, %v893_v59 }
 0x2e8   :  { %1580 = vmatpush3.msra.mxu1 %v1156_v10 }
 0x2e9   :  { %1581 = vmatprep.subr.mxu1 %v1155_v14 }
 0x2ea   :  { %1582 = vmatpush3.msra.mxu1 %v1155_v14  ;;  %v32_v14 = vld [vmem:[%s1945_s2] sm:$0xff] }
 0x2eb   :  { %1583 = vmatprep.subr.mxu1 %v1154_v15 }
 0x2ec   :  { %1584 = vmatpush3.msra.mxu1 %v1154_v15 }
 0x2ed   :  { %1585 = vmatprep.subr.mxu1 %v1153_v16 }
 0x2ee   :  { %1586 = vmatpush3.msra.mxu1 %v1153_v16 }
 0x3a7   :  { %v1564_v62 = vpop.f32.mrf.mxu1 }
 0x3a8   :  { %v981_v63 = vadd.f32 %v1564_v62, %v901_v61 }
 0x3a9   :  { %v975_v2 = vpop.f32.mrf.mxu1 }
 0x3aa   :  { %v976_v0 = vadd.f32 %v975_v2, %v901_v61  ;;  %1566 = vmatpush3.msra.mxu0 %v981_v63 }
 0x3ab   :  { %1567 = vmatprep.subr.mxu0 %v1653_v1 }
 0x3ac   :  { %1568 = vmatpush3.msra.mxu0 %v976_v0 }
 0x3ad   :  { %1570 = vmatmul.mubr.msk.f32.vlgmr.msra.gmra.mxu0 %vm721_vm0, %v1830_v34  ;;  %1572 = vmatprep.subr.mxu0 %v1653_v1 }
 0x3ae   :  { %1576 = vmatprep.mubr.msk.f32.mxu0 %vm1654_vm5, %v1653_v1 }
 0x46d   :  { %v1050_v28 = vpop.f32.mrf.mxu0 }
 0x46e   :  { %v1057_v3 = vrot.slane %v1050_v28, %v1818_v20 }
 0x46f   :  { %v1571_v4 = vpop.f32.mrf.mxu0 }
 0x470   :  { %v1058_v5 = vsub.f32 %v976_v0, %v1057_v3  ;;  %v1059_v6 = vsub.f32 %v981_v63, %v1057_v3 }
 0x472   :  { %v1061_v8 = vmul.f32 %v1059_v6, %v1059_v6  ;;  %v1060_v9 = vmul.f32 %v1058_v5, %v1058_v5 }
 0x474   :  { %1573 = vmatpush3.msra.mxu0 %v1061_v8  ;;  %v1307_v8 = vld [vmem:[%s1944_s7] sm:$0xff]  ;;  %s1657_s7 = smov 24  }
 0x475   :  { %1574 = vmatprep.subr.mxu0 %v1653_v1 }
 0x476   :  { %1575 = vmatpush3.msra.mxu0 %v1060_v9 }
 0x477   :  { %1577 = vmatmul.mubr.msk.f32.vlgmr.msra.gmra.mxu0 %vm721_vm0, %v1830_v34  ;;  %1590 = vmatprep.subr.mxu0 %v1307_v8 }
 0x478   :  { %1591 = vmatpush3.msra.mxu0 %v1307_v8 }
 0x537   :  { %v1128_v1 = vpop.f32.mrf.mxu0 }
 0x538   :  { %v1129_v17 = vadd.f32 1e-05, %v1128_v1 }
 0x539   :  { %v1578_v18 = vpop.f32.mrf.mxu0 }
 0x53a   :  { %1628 = vrsqrt.f32 %v1129_v17  ;;  %v33_v17 = vld [vmem:[%s1945_s2 + $0x8] sm:$0xff]  ;;  %s1659_s2 = smov 16  }
 0x547   :  { %v1629_v13 = vpop.eup %1628 }
 0x548   :  { %v1136_v23 = vrot.slane %v1629_v13, %v1818_v20  ;;  %v1160_v20 = vrot.slane %v1823_v22, %v1159_v36 }
 0x54a   :  { %v1137_v26 = vmul.f32 %v1136_v23, %v1058_v5  ;;  %v1138_v29 = vmul.f32 %v1136_v23, %v1059_v6 }
 0x54c   :  { %v1143_v32 = vmul.f32 %v1142_v24, %v1137_v26  ;;  %v1144_v25 = vmul.f32 %v1142_v24, %v1138_v29 }
 0x54e   :  { %v1149_v27 = vadd.f32 %v1148_v31, %v1143_v32  ;;  %v1150_v33 = vadd.f32 %v1148_v31, %v1144_v25 }
 0x550   :  { %v1151_v34 = vmax.f32 %v1149_v27, 0.0  ;;  %v1152_v35 = vmax.f32 %v1150_v33, 0.0 }
 0x552   :  { %1587 = vmatprep.mubr.msk.f32.mxu1 %vm902_vm6, %v1151_v34 }
 0x553   :  { %1588 = vmatmul.mubr.msk.f32.vlgmr.msra.gmra.mxu1 %vm902_vm6, %v1152_v35  ;;  %v1310_v35 = vsub.s32 7, %v1815_v21 }
 0x555   :  { %v1311_v36 = vrot.slane %v1823_v22, %v1310_v35 }
 0x613   :  { %v1589_v37 = vpop.f32.mrf.mxu1 }
 0x614   :  { %v1894_v38 = vadd.f32 %v1589_v37, %v1160_v20 }
 0x615   :  { %v1233_v39 = vpop.f32.mrf.mxu1 }
 0x616   :  { %v1896_v40 = vadd.f32 %v1233_v39, %v1160_v20  ;;  %v1261_v42 = vrot.slane %v1894_v38, 1  ;;  %v1243_v5 = vmul.f32 0.5, %v1894_v38 }
 0x618   :  { %v1260_v41 = vrot.slane %v1896_v40, 1  ;;  %v1242_v4 = vmul.f32 0.5, %v1896_v40  ;;  %v1246_v9 = vmul.f32 1.442695, %v1243_v5 }
 0x61a   :  { %v1265_v43 = vsel %vm1264_vm7, %v1260_v41, %v1261_v42  ;;  %v1266_v44 = vsel %vm1264_vm7, %v1261_v42, %v1260_v41  ;;  %v1244_v6 = vmul.f32 1.442695, %v1242_v4 }
 0x61b   :  { %v1902_v7 = vsub.f32 %v1265_v43, %v1896_v40  ;;  %v1268_v45 = vsub.f32 %v1266_v44, %v1894_v38  ;;  %v1271_v46 = vsub.f32 %v1896_v40, %v1265_v43  ;;  %v1272_v48 = vsub.f32 %v1894_v38, %v1266_v44 }
 0x61c   :  { %v1269_v59 = vmax.f32 %v1896_v40, %v1265_v43  ;;  %v1270_v62 = vmax.f32 %v1894_v38, %v1266_v44 }
 0x61d   :  { %1299 = vrot.lane.b32.xlu1 %v1902_v7, %s1655_s6  ;;  %v1273_v47 = vand.u32 2147483647, %v1271_v46  ;;  %v1274_v50 = vand.u32 2147483647, %v1272_v48 }
 0x61f   :  { %v1275_v49 = vsub.f32 0.0, %v1273_v47  ;;  %v1276_v52 = vsub.f32 0.0, %v1274_v50 }
 0x621   :  { %1301 = vrot.lane.b32.xlu1 %v1268_v45, %s1655_s6  ;;  %v1277_v51 = vmul.f32 1.442695, %v1275_v49  ;;  %v1279_v53 = vmul.f32 1.442695, %v1276_v52 }
 0x623   :  { %1630 = vpow2.f32 %v1277_v51 }
 0x624   :  { %1632 = vpow2.f32 %v1279_v53 }
 0x630   :  { %v1631_v54 = vpop.eup %1630 }
 0x631   :  { %v1281_v12 = vadd.f32 1.0, %v1631_v54  ;;  %v1633_v30 = vpop.eup %1632 }
 0x632   :  { %v1282_v55 = vadd.f32 1.0, %v1633_v30 }
 0x633   :  { %1634 = vlog2.f32 %v1281_v12 }
 0x634   :  { %1636 = vlog2.f32 %v1282_v55 }
 0x640   :  { %v1635_v56 = vpop.eup %1634 }
 0x641   :  { %v1284_v57 = vmul.f32 0.6931472, %v1635_v56  ;;  %v1637_v58 = vpop.eup %1636 }
 0x642   :  { %v1286_v61 = vmul.f32 0.6931472, %v1637_v58 }
 0x643   :  { %v1287_v60 = vadd.f32 %v1284_v57, %v1269_v59 }
 0x644   :  { %v1288_v2 = vadd.f32 %v1286_v61, %v1270_v62 }
 0x645   :  { %v1289_v63 = vmul.f32 0.5, %v1287_v60 }
 0x646   :  { %v1290_v28 = vmul.f32 0.5, %v1288_v2 }
 0x647   :  { %v1291_v0 = vmul.f32 1.442695, %v1289_v63 }
 0x648   :  { %v1293_v3 = vmul.f32 1.442695, %v1290_v28 }
 0x649   :  { %1638 = vpow2.f32 %v1291_v0 }
 0x64a   :  { %1640 = vpow2.f32 %v1293_v3 }
 0x64b   :  { %1642 = vpow2.f32 %v1244_v6 }
 0x64c   :  { %1644 = vpow2.f32 %v1246_v9 }
 0x656   :  { %v1639_v10 = vpop.eup %1638 }
 0x657   :  { %v1295_v15 = vmul.f32 %v1639_v10, %v32_v14  ;;  %v1641_v16 = vpop.eup %1640 }
 0x658   :  { %v1296_v19 = vmul.f32 %v1641_v16, %v33_v17  ;;  %v1643_v23 = vpop.eup %1642 }
 0x659   :  { %v1645_v24 = vpop.eup %1644 }
 0x68f   :  { %v1300_v1 = vpop.permute.xlu1 %1299 }
 0x690   :  { %v1305_v18 = vadd.f32 %v1300_v1, %v1295_v15 }
 0x692   :  { %1314 = vrot.lane.b32.xlu0 %v1305_v18, %s1656_s13 }
 0x693   :  { %v1302_v11 = vpop.permute.xlu1 %1301 }
 0x694   :  { %v1306_v13 = vadd.f32 %v1302_v11, %v1296_v19 }
 0x696   :  { %1316 = vrot.lane.b32.xlu1 %v1306_v13, %s1656_s13  ;;  %1250 = vrot.lane.b32.xlu0 %v1643_v23, %s1656_s13 }
 0x69a   :  { %1252 = vrot.lane.b32.xlu1 %v1645_v24, %s1656_s13  ;;  %1406 = vrot.lane.b32.xlu0 %v1902_v7, %s1657_s7 }
 0x69e   :  { %1408 = vrot.lane.b32.xlu1 %v1268_v45, %s1657_s7  ;;  %1414 = vrot.lane.b32.xlu0 %v1287_v60, %s1657_s7 }
 0x6a2   :  { %1416 = vrot.lane.b32.xlu1 %v1288_v2, %s1657_s7  ;;  %1420 = vrot.lane.b32.xlu0 %v1305_v18, %s1658_s0 }
 0x6a6   :  { %1422 = vrot.lane.b32.xlu1 %v1306_v13, %s1658_s0 }
 0x704   :  { %v1315_v26 = vpop.permute.xlu0 %1314 }
 0x705   :  { %1592 = vmatprep.mubr.msk.f32.mxu0 %vm1318_vm8, %v1315_v26 }
 0x708   :  { %v1317_v29 = vpop.permute.xlu1 %1316  ;;  %v1251_v31 = vpop.permute.xlu0 %1250 }
 0x709   :  { %v1256_v32 = vmul.f32 %v1251_v31, %v32_v14  ;;  %1593 = vmatmul.mubr.msk.f32.vlgmr.msra.gmra.mxu0 %vm1318_vm8, %v1317_v29 }
 0x70b   :  { %v1258_v25 = vadd.f32 %v1256_v32, %v1896_v40 }
 0x70c   :  { %v1253_v27 = vpop.permute.xlu1 %1252  ;;  %v1407_v43 = vpop.permute.xlu0 %1406 }
 0x70d   :  { %v1257_v33 = vmul.f32 %v1253_v27, %v33_v17  ;;  %1400 = vrot.lane.b32.xlu0 %v1258_v25, %s1659_s2 }
 0x70f   :  { %v1259_v34 = vadd.f32 %v1257_v33, %v1894_v38 }
 0x710   :  { %v1409_v42 = vpop.permute.xlu1 %1408  ;;  %v1415_v44 = vpop.permute.xlu0 %1414 }
 0x711   :  { %1402 = vrot.lane.b32.xlu1 %v1259_v34, %s1659_s2 }
 0x714   :  { %v1417_v7 = vpop.permute.xlu1 %1416  ;;  %v1421_v46 = vpop.permute.xlu0 %1420 }
 0x718   :  { %v1423_v45 = vpop.permute.xlu1 %1422 }
 0x77f   :  { %v1401_v48 = vpop.permute.xlu0 %1400 }
 0x780   :  { %v1434_v22 = vsel %vm721_vm0, %v1896_v40, %v1401_v48 }
 0x781   :  { %v1437_v50 = vsel %vm1436_vm9, %v1434_v22, %v1407_v43 }
 0x782   :  { %v1439_v52 = vsel %vm902_vm6, %v1437_v50, %v1415_v44 }
 0x783   :  { %v1403_v47 = vpop.permute.xlu1 %1402 }
 0x784   :  { %v1435_v21 = vsel %vm721_vm0, %v1894_v38, %v1403_v47  ;;  %v1442_v38 = vsel %vm1441_vm11, %v1439_v52, %v1421_v46 }
 0x785   :  { %v1438_v49 = vsel %vm1436_vm9, %v1435_v21, %v1409_v42 }
 0x786   :  { %v1440_v51 = vsel %vm902_vm6, %v1438_v49, %v1417_v7 }
 0x787   :  { %v1443_v53 = vsel %vm1441_vm11, %v1440_v51, %v1423_v45 }
 0x7c9   :  { %v1594_v20 = vpop.f32.mrf.mxu0 }
 0x7ca   :  { %v1395_v37 = vadd.f32 %v1594_v20, %v1311_v36 }
 0x7cb   :  { %v1389_v39 = vpop.f32.mrf.mxu0 }
 0x7cc   :  { %v1390_v41 = vadd.f32 %v1389_v39, %v1311_v36  ;;  %1430 = vrot.lane.b32.xlu1 %v1395_v37, %s1660_s3 }
 0x7ce   :  { %1428 = vrot.lane.b32.xlu0 %v1390_v41, %s1660_s3 }
 0x83e   :  { %v1431_v54 = vpop.permute.xlu1 %1430 }
 0x83f   :  { %v1446_v12 = vsel %vm1444_vm10, %v1443_v53, %v1431_v54 }
 0x840   :  { %1449 = vst.msk [vmem:[%s1946_s8 + $0x8] sm:$0xff] %vm1447_vm12, %v1446_v12  ;;  %v1429_v30 = vpop.permute.xlu0 %1428 }
 0x841   :  { %v1445_v55 = vsel %vm1444_vm10, %v1442_v38, %v1429_v30 }
 0x842   :  { %1448 = vst.msk [vmem:[%s1946_s8] sm:$0xff] %vm1447_vm12, %v1445_v55 }

</bundles_post_ra>
